<compile_context>
chip_gen: v7x
topology: tpu7x:2x2x1
jax: 0.10.0
libtpu: 0.0.40
codegen_flags: <defaults>
</compile_context>

<pallas_src>
import math

import jax
import jax.numpy as jnp
from jax.experimental import pallas as pl
from jax.experimental.pallas import tpu as pltpu


# ----------------------------- Pallas kernels ------------------------------ #

def _dyrelu_bcast_kernel(x_ref, a1_ref, a2_ref, o_ref):
    """out = max(x * a1, a2); x block (tb, t_r, W), a blocks (tb, 1, W)."""
    x = x_ref[...].astype(jnp.float32)
    a1 = a1_ref[...].astype(jnp.float32)
    a2 = a2_ref[...].astype(jnp.float32)
    o_ref[...] = jnp.maximum(x * a1, a2).astype(o_ref.dtype)


def _dyrelu_flat_kernel(x_ref, a1_ref, a2_ref, o_ref):
    """Elementwise out = max(x * a1, a2) on matching 2-D lane-dense blocks."""
    x = x_ref[...].astype(jnp.float32)
    a1 = a1_ref[...].astype(jnp.float32)
    a2 = a2_ref[...].astype(jnp.float32)
    o_ref[...] = jnp.maximum(x * a1, a2).astype(o_ref.dtype)


# ------------------------------- tiling utils ------------------------------ #

def _sublane_multiple(dtype):
    """f32 -> 8, bf16 -> 16, int8/fp8 -> 32 (full packed vregs / unmasked DMA)."""
    return max(8, 32 // max(1, jnp.dtype(dtype).itemsize))


def _pick_divisor(n, multiple, max_tile):
    """Largest divisor t of n with t <= max_tile and t % multiple == 0, else None."""
    cap = min(n, max_tile)
    t = (cap // multiple) * multiple
    while t >= multiple:
        if n % t == 0:
            return t
        t -= multiple
    return None


def _plan_rows(rows, rows_budget, s_mult):
    """Pick (t_rows, rows_pad): t_rows divides rows_pad >= rows; t_rows is either
    the full (possibly ragged) dim or a multiple of the dtype sublane count."""
    if rows <= rows_budget:
        return rows, rows                           # full-dim block is always legal
    t = _pick_divisor(rows, s_mult, rows_budget)
    if t is not None:
        return t, rows                              # exact tiling, no padding
    t = max(s_mult, (rows_budget // s_mult) * s_mult)
    rows_pad = ((rows + t - 1) // t) * t
    return t, rows_pad


def _compiler_params(n_grid_axes, x_block_bytes, a_block_bytes):
    # Pipeline footprint: double-buffered x-in + out blocks, plus a1 + a2 blocks.
    footprint = 4 * x_block_bytes + 4 * a_block_bytes
    vmem_limit = int(min(64 << 20, max((footprint * 3) // 2, 16 << 20)))
    return pltpu.CompilerParams(
        dimension_semantics=("parallel",) * n_grid_axes,
        vmem_limit_bytes=vmem_limit,
    )


# --------------------------------- wrapper ---------------------------------- #

def dyrelu_forward(x, w1, b1, w2, b2, *, block_bytes=2 << 20):
    """DyReLU forward.

    x : (B, C) or (B, L, C) with channels last.
    w1: (C//r, C), b1: (C//r,)   -- fc[0]
    w2: (2C, C//r), b2: (2C,)    -- fc[2]
    block_bytes: approximate per-block x/out tile size for the streaming pass
                 (2 MiB default; v5e needs no more, v7x tolerates 4-8 MiB).
    """
    f32 = jnp.float32
    C = x.shape[-1]

    # ---- tiny prologue: pool + 2-layer MLP -> a1, a2 (O(B*C), plain XLA, f32) ----
    if x.ndim == 2:
        x_pool = x.astype(f32)                       # pool over a size-1 axis
    else:
        x_pool = jnp.mean(x.astype(f32), axis=1)     # (B, C), f32 accumulate
    h = jnp.maximum(x_pool @ w1.astype(f32).T + b1.astype(f32), 0.0)
    theta = h @ w2.astype(f32).T + b2.astype(f32)    # (B, 2C)
    a1 = jax.nn.sigmoid(theta[:, :C]) * 2.0 + 0.5    # (B, C)
    a2 = jax.nn.sigmoid(theta[:, C:]) * 2.0          # (B, C)
    # TODO(synk): fuse pool + MLP + apply into a single Pallas pass (grid over B,
    # x slab VMEM-resident) to avoid reading x from HBM twice when the slab fits.

    # Store a1/a2 in x's dtype (kernel math stays f32) -> half a-tile HBM/VMEM.
    a_dtype = x.dtype if jnp.issubdtype(x.dtype, jnp.floating) else f32
    a1 = a1.astype(a_dtype)
    a2 = a2.astype(a_dtype)

    itemsize = jnp.dtype(x.dtype).itemsize
    a_itemsize = jnp.dtype(a_dtype).itemsize
    s_mult = _sublane_multiple(x.dtype)

    # Lane-dense regrouping factor: g rows of C channels -> one row of W lanes.
    g = 128 // math.gcd(C, 128)
    W = g * C                                        # multiple of 128

    # ---- 2-D (B, C): a1/a2 match x elementwise -> same lane-dense regroup ----
    if x.ndim == 2:
        B = x.shape[0]
        rows = pl.cdiv(B, g)
        rows_budget = max(s_mult, block_bytes // (W * itemsize))
        t_rows, rows_pad = _plan_rows(rows, rows_budget, s_mult)
        B_pad = rows_pad * g

        def regroup(arr):
            if B_pad != B:
                arr = jnp.pad(arr, ((0, B_pad - B), (0, 0)))
            return arr.reshape(rows_pad, W)

        spec = pl.BlockSpec((t_rows, W), lambda i: (i, 0))
        out = pl.pallas_call(
            _dyrelu_flat_kernel,
            out_shape=jax.ShapeDtypeStruct((rows_pad, W), x.dtype),
            grid=(rows_pad // t_rows,),
            in_specs=[spec, spec, spec],
            out_specs=spec,
            compiler_params=_compiler_params(
                1, t_rows * W * itemsize, t_rows * W * a_itemsize),
        )(regroup(x), regroup(a1), regroup(a2))
        return out.reshape(B_pad, C)[:B]

    # ---- 3-D (B, L, C): streaming apply out = max(x * a1, a2) ----
    B, L, _ = x.shape
    R = pl.cdiv(L, g)                                # lane-dense rows per batch
    per_b_bytes = R * W * itemsize

    if per_b_bytes <= block_bytes:
        # Whole per-batch slab fits one block: tile over batch; cap so the grid
        # keeps >= 2 steps (both v7x TensorCores busy; no-op on v5e/v6e).
        t_r, R_pad = R, R
        tb_cap = max(1, block_bytes // max(1, per_b_bytes))
        if B >= 2:
            tb_cap = min(tb_cap, max(1, B // 2))
        tb = _pick_divisor(B, 1, tb_cap)
    else:
        tb = 1
        rows_budget = max(s_mult, block_bytes // (W * itemsize))
        t_r, R_pad = _plan_rows(R, rows_budget, s_mult)

    L_pad = R_pad * g
    x_work = x if L_pad == L else jnp.pad(x, ((0, 0), (0, L_pad - L), (0, 0)))
    x_work = x_work.reshape(B, R_pad, W)

    # a1/a2 stay at one W-wide row per batch element (tiny HBM/VMEM footprint);
    # the broadcast over rows happens inside the kernel (free on the VPU).
    a1r = jnp.tile(a1, (1, g)).reshape(B, 1, W)
    a2r = jnp.tile(a2, (1, g)).reshape(B, 1, W)

    x_spec = pl.BlockSpec((tb, t_r, W), lambda i, j: (i, j, 0))
    a_spec = pl.BlockSpec((tb, 1, W), lambda i, j: (i, 0, 0))   # j-invariant
    out = pl.pallas_call(
        _dyrelu_bcast_kernel,
        out_shape=jax.ShapeDtypeStruct((B, R_pad, W), x.dtype),
        grid=(B // tb, R_pad // t_r),
        in_specs=[x_spec, a_spec, a_spec],
        out_specs=x_spec,
        compiler_params=_compiler_params(
            2, tb * t_r * W * itemsize, tb * W * a_itemsize),
    )(x_work, a1r, a2r)

    out = out.reshape(B, L_pad, C)
    if L_pad != L:
        out = out[:, :L, :]
    return out


# -------------------------------- reference --------------------------------- #

def dyrelu_reference(x, w1, b1, w2, b2):
    """Pure-JAX reference mirroring the PyTorch forward (intended semantics)."""
    f32 = jnp.float32
    C = x.shape[-1]
    if x.ndim == 2:
        x_pool = x.astype(f32)
    else:
        x_pool = jnp.mean(x.astype(f32), axis=1)
    h = jnp.maximum(x_pool @ w1.astype(f32).T + b1.astype(f32), 0.0)
    theta = h @ w2.astype(f32).T + b2.astype(f32)
    a1 = jax.nn.sigmoid(theta[:, :C]) * 2.0 + 0.5
    a2 = jax.nn.sigmoid(theta[:, C:]) * 2.0
    if x.ndim == 2:
        out = jnp.maximum(x.astype(f32) * a1, a2)
    else:
        out = jnp.maximum(x.astype(f32) * a1[:, None, :], a2[:, None, :])
    return out.astype(x.dtype)


# ----------------------------------- demo ------------------------------------ #

if __name__ == "__main__":
    key = jax.random.PRNGKey(0)

    def make_params(k, C, r):
        kw1, kb1, kw2, kb2 = jax.random.split(k, 4)
        Cr = max(1, C // r)
        # Same shapes as the PyTorch __init__; fc[2] gets small nonzero values
        # (instead of the zero init) so the data-dependent a1/a2 path is exercised.
        w1 = jax.random.normal(kw1, (Cr, C), jnp.float32) * 0.1
        b1 = jax.random.normal(kb1, (Cr,), jnp.float32) * 0.1
        w2 = jax.random.normal(kw2, (2 * C, Cr), jnp.float32) * 0.1
        b2 = jax.random.normal(kb2, (2 * C,), jnp.float32) * 0.1
        return w1, b1, w2, b2

    def check(x, params, block_bytes=2 << 20, atol=1e-5, rtol=1e-5):
        out = jax.block_until_ready(
            dyrelu_forward(x, *params, block_bytes=block_bytes))
        ref = dyrelu_reference(x, *params)
        assert out.shape == ref.shape and out.dtype == ref.dtype
        return bool(jnp.allclose(out.astype(jnp.float32), ref.astype(jnp.float32),
                                 atol=atol, rtol=rtol))

    keys = jax.random.split(key, 8)
    ok = True

    # Case 1: batch-tiled lane-dense path (whole per-b slab fits one block).
    C, r = 32, 4
    p32 = make_params(keys[0], C, r)
    x1 = jax.random.normal(keys[1], (4, 64, C), jnp.float32)
    ok &= check(x1, p32)

    # Case 2: row-tiled path with row padding (R=22 -> 24, t_r=8), 2-axis grid.
    x2 = jax.random.normal(keys[2], (4, 88, C), jnp.float32)
    ok &= check(x2, p32, block_bytes=4096)

    # Case 3: C not a divisor of 128 -> L padded to a multiple of g=16.
    C3 = 24
    p24 = make_params(keys[3], C3, r)
    x3 = jax.random.normal(keys[4], (2, 12, C3), jnp.float32)
    ok &= check(x3, p24)

    # Case 4: bf16 input (dtype-aware sublane tiling + a1/a2 downcast).
    x4 = jax.random.normal(keys[5], (4, 64, C), jnp.float32).astype(jnp.bfloat16)
    ok &= check(x4, p32, atol=5e-2, rtol=5e-2)

    # Case 5: 2-D (B, C) path with B padded to a multiple of g=4.
    x5 = jax.random.normal(keys[6], (10, C), jnp.float32)
    ok &= check(x5, p32)

    assert ok, "mismatch vs reference"
    print("KERNEL_OK")
</pallas_src>

<mosaic_0001>
module attributes {stable_mosaic.version = 11 : i64} {
  func.func @_dyrelu_bcast_kernel(%arg0: i32, %arg1: i32, %arg2: memref<2x16x128xf32, #tpu.memory_space<vmem>>, %arg3: memref<2x1x128xf32, #tpu.memory_space<vmem>>, %arg4: memref<2x1x128xf32, #tpu.memory_space<vmem>>, %arg5: memref<2x16x128xf32, #tpu.memory_space<vmem>>) attributes {dimension_semantics = [#tpu.dimension_semantics<parallel>, #tpu.dimension_semantics<parallel>], iteration_bounds = array<i64: 2, 1>, scalar_prefetch = 0 : i64, scratch_operands = 0 : i64, tpu.core_type = #tpu.core_type<tc>, window_params = [{transform_indices = @transform_0, window_bounds = array<i64: 2, 16, 128>}, {transform_indices = @transform_1, window_bounds = array<i64: 2, 1, 128>}, {transform_indices = @transform_2, window_bounds = array<i64: 2, 1, 128>}, {transform_indices = @transform_3, window_bounds = array<i64: 2, 16, 128>}]} {
    %c0 = arith.constant 0 : index
    %c0_0 = arith.constant 0 : index
    %c0_1 = arith.constant 0 : index
    %0 = vector.load %arg2[%c0, %c0_0, %c0_1] : memref<2x16x128xf32, #tpu.memory_space<vmem>>, vector<2x16x128xf32>
    %c0_2 = arith.constant 0 : index
    %c0_3 = arith.constant 0 : index
    %c0_4 = arith.constant 0 : index
    %1 = vector.load %arg3[%c0_2, %c0_3, %c0_4] : memref<2x1x128xf32, #tpu.memory_space<vmem>>, vector<2x1x128xf32>
    %c0_5 = arith.constant 0 : index
    %c0_6 = arith.constant 0 : index
    %c0_7 = arith.constant 0 : index
    %2 = vector.load %arg4[%c0_5, %c0_6, %c0_7] : memref<2x1x128xf32, #tpu.memory_space<vmem>>, vector<2x1x128xf32>
    %3 = vector.broadcast %1 : vector<2x1x128xf32> to vector<2x16x128xf32>
    %4 = arith.mulf %0, %3 : vector<2x16x128xf32>
    %5 = vector.broadcast %2 : vector<2x1x128xf32> to vector<2x16x128xf32>
    %6 = arith.maximumf %4, %5 : vector<2x16x128xf32>
    %c0_8 = arith.constant 0 : index
    %c0_9 = arith.constant 0 : index
    %c0_10 = arith.constant 0 : index
    %7 = vector.load %arg5[%c0_8, %c0_9, %c0_10] : memref<2x16x128xf32, #tpu.memory_space<vmem>>, vector<2x16x128xf32>
    tpu.vector_store %arg5[%c0_8, %c0_9, %c0_10], %6 {strides = array<i32>} : memref<2x16x128xf32, #tpu.memory_space<vmem>>, vector<2x16x128xf32>,
    return
  }
  func.func @transform_0(%arg0: i32, %arg1: i32) -> (i32, i32, i32) {
    %c0_i32 = arith.constant 0 : i32
    %c0_i32_0 = arith.constant 0 : i32
    return %arg0, %arg1, %c0_i32 : i32, i32, i32
  }
  func.func @transform_1(%arg0: i32, %arg1: i32) -> (i32, i32, i32) {
    %c0_i32 = arith.constant 0 : i32
    %c0_i32_0 = arith.constant 0 : i32
    %c0_i32_1 = arith.constant 0 : i32
    return %arg0, %c0_i32, %c0_i32_0 : i32, i32, i32
  }
  func.func @transform_2(%arg0: i32, %arg1: i32) -> (i32, i32, i32) {
    %c0_i32 = arith.constant 0 : i32
    %c0_i32_0 = arith.constant 0 : i32
    %c0_i32_1 = arith.constant 0 : i32
    return %arg0, %c0_i32, %c0_i32_0 : i32, i32, i32
  }
  func.func @transform_3(%arg0: i32, %arg1: i32) -> (i32, i32, i32) {
    %c0_i32 = arith.constant 0 : i32
    %c0_i32_0 = arith.constant 0 : i32
    return %arg0, %arg1, %c0_i32 : i32, i32, i32
  }
}

</mosaic_0001>

<bundles_post_ra>
// kernel: tpu_custom_call.1
= control target key start
LH: loop header
LB: loop body
LE: loop exit
PB: predicated region body
PF: predicated region fallthrough
CT: control target
= control target key end

     0   :  { %8 = vsyncpa [#allocation3], 0  ;;  %s962_s0 = inlined_call_operand.hbm [shape: f32[4,16,128], index: 0, kind: input, shape index: {}]   ;;  %s963_s1 = inlined_call_operand.hbm [shape: f32[4,1,128], index: 1, kind: input, shape index: {}]   ;;  %s964_s2 = inlined_call_operand.vmem [shape: f32[4,1,128], index: 2, kind: input, shape index: {}]   ;;  %s965_s3 = inlined_call_operand.hbm [shape: f32[4,16,128], index: 3, kind: output, shape index: {}]  }
   0x1   :  { %10 = vsyncpa [#allocation3 + $0x1], 0 }
   0x2   :  { %11 = vsyncpa [#allocation6], 0 }
   0x3   :  { %13 = vsyncpa [#allocation6 + $0x1], 0 }
   0x4   :  { %14 = vsyncpa [#allocation4], 0 }
   0x5   :  { %16 = vsyncpa [#allocation4 + $0x1], 0  ;;  %s733_s12 = smov 0   ;;  %s735_s13 = smov 0  }
   0x6   :  { %s737_s14 = smov 0   ;;  %s739_s15 = smov 0  }
   0x7   :  { %s741_s16 = smov 0   ;;  %s743_s17 = smov 0  }
   0x8 LB: > { %s452_s18 = sadd.s32 4294967295, %s702_s17   ;;  %s453_s19 = sadd.s32 4294967294, %s702_s17   ;;  %s702_s17 = sphi %s743_s17, %s22_s17   ;;  %s698_s16 = sphi %s741_s16, %s983_s16   ;;  %s694_s15 = sphi %s739_s15, %s982_s15   ;;  %s690_s14 = sphi %s737_s14, %s981_s14   ;;  %s686_s13 = sphi %s735_s13, %s980_s13   ;;  %s682_s12 = sphi %s733_s12, %s979_s12  }
   0x9   : > { %s34_s20 = sadd.s32 1, %s698_s16  ;;  %s43_s21 = sadd.s32 1, %s690_s14 }
   0xa   : > { %p36_p0 = scmp.ge.s32.totalorder %s34_s20, 2  ;;  %p50_p1 = scmp.ne.s32.totalorder %s690_s14, %s686_s13 }
   0xb   : > { %p51_p2 = scmp.eq.s32.totalorder %s702_s17, 0  ;;  %p56_p3 = scmp.ne.s32.totalorder %s686_s13, %s682_s12 }
   0xc   : > { %s985_s20 = smov (%p36_p0, %s34_s20), 0  ;;  %p57_p5 = scmp.eq.s32.totalorder %s452_s18, 0 }
   0xd   : > { %p774_p4 = por %p51_p2, %p50_p1  ;;  %s38_s23 = ssub.s32 %s698_s16, %s985_s20 }
   0xe   : > { %p134_p6 = scmp.eq.s32.totalorder %s452_s18, 1  ;;  %p41_p7 = scmp.eq.s32.totalorder %s38_s23, 0 }
   0xf   : > { %p780_p8 = por %p57_p5, %p56_p3  ;;  %p140_p10 = scmp.eq.s32.totalorder %s453_s19, 1 }
  0x10   : > { %p784_p9 = por %p134_p6, %p50_p1  ;;  %p500_p13 = scmp.lt.s32.totalorder %s702_s17, 2 }
  0x11   : > { %s969_s24 = scalar_select %p780_p8, 1, 0 }
  0x12   : > { %s970_s25 = scalar_select %p784_p9, 1, 0 }
  0x13   : > { %s789_s26 = scalar_select %p41_p7, %s690_s14, %s43_s21  }
  0x14   : > { %p791_p11 = por %p140_p10, %p56_p3  ;;  %s798_s28 = sand.u32 1, %s690_s14  }
  0x15   : > { %s456_s29 = sshll.u32 %s798_s28, 5  ;;  %s479_s30 = sshll.u32 %s698_s16, 9 }
  0x16   : > { %s971_s27 = scalar_select %p791_p11, 1, 0 }
  0x17   : > { %s805_s6 = scalar_lea.hbm %s962_s0, %s479_s30  ;;  %s164_s7 = scalar_lea.vmem [#allocation2], %s456_s29 }
  0x18   : > { %s174_s8 = sshll.u32 %s164_s7, 4  ;;  %p811_p0 = pnand %p500_p13, %p774_p4  ;;  %s807_s8 = int_to_ptr.vmem [resolvable:$true] %s174_s8 }
  0x19   : > { %s161_s10 = scalar_lea.sflag [#allocation3], %s798_s28  ;;  %s556_s11 = scalar_lea.hbm %s805_s6, 512 }
  0x1a   : > { %p557_p2 = scmp.ne.s32.totalorder %s805_s6, %s556_s11  ;;  %p558_p3 = pneg %p811_p0 }
  0x1b   : > { %s561_s21 = scalar_lea.hbm %s962_s0, 1024  ;;  %p562_p4 = scmp.lt.u32.totalorder %s805_s6, %s962_s0 }
  0x1c   : > { %p559_p5 = pnand %p558_p3, %p557_p2  ;;  %p563_p7 = scmp.lt.u32.totalorder %s561_s21, %s556_s11 }
  0x1d   : > { %p565_p13 = scmp.lt.u32.totalorder %s556_s11, %s805_s6 }
  0x1e   : > { %p560_p6 = pneg %p559_p5  ;;  %p564_p10 = por %p563_p7, %p562_p4 }
  0x20   : > { %p566_p12 = por %p565_p13, %p564_p10 }
  0x22   : > { %p567_p1 = pnand %p566_p12, %p560_p6 }
  0x24   : > { %570 = shalt.err (!%p567_p1)
}
  0x25   : > { %s571_s29 = scalar_lea.vmem %s807_s8, 512  ;;  %s704_s30 = smov [#allocation2]  }
  0x26   : > { %p572_p2 = scmp.ne.s32.totalorder %s807_s8, %s571_s29  ;;  %s576_s4 = sshll.u32 %s704_s30, 4  ;;  %s577_s4 = int_to_ptr.vmem [resolvable:$false] %s576_s4 }
  0x27   : > { %s578_s5 = scalar_lea.vmem %s577_s4, 1024  ;;  %p579_p9 = scmp.lt.s32.totalorder %s807_s8, %s577_s4 }
  0x28   : > { %p574_p5 = pnand %p572_p2, %p558_p3  ;;  %p580_p4 = scmp.lt.s32.totalorder %s578_s5, %s571_s29 }
  0x2a   : > { %p575_p11 = pneg %p574_p5  ;;  %p581_p7 = por %p580_p4, %p579_p9 }
  0x2c   : > { %p582_p10 = pnand %p581_p7, %p575_p11 }
  0x2e   : > { %585 = shalt.err (!%p582_p10)
}
  0x2f   : > { %s705_s7 = smov 128   ;;  %s706_s11 = smov 8  }
  0x30   : > { %492 = dma.hbm_to_vmem [thread:$0]  (!%p811_p0), %s805_s6, 512, %s807_s8, %s161_s10, %s705_s7, %s705_s7, %s706_s11  }
  0x31   : > { %p211_p12 = scmp.lt.s32.totalorder %s702_s17, 3  ;;  %s460_s18 = sshll.u32 %s798_s28, 1 }
  0x32   : > { %s480_s19 = sshll.u32 %s698_s16, 5  ;;  %p973_p9 = scmp.ge.s32.totalorder %s702_s17, 1 }
  0x33   : > { %s856_s29 = scalar_lea.hbm %s963_s1, %s480_s19  ;;  %s188_s30 = scalar_lea.vmem [#allocation5], %s460_s18 }
  0x34   : > { %p849_p11 = pnand %p973_p9, %p211_p12  ;;  %s195_s4 = sshll.u32 %s188_s30, 4  ;;  %s858_s4 = int_to_ptr.vmem [resolvable:$true] %s195_s4 }
  0x35   : > { %s185_s6 = scalar_lea.sflag [#allocation6], %s798_s28  ;;  %s586_s8 = scalar_lea.hbm %s856_s29, 32 }
  0x36   : > { %p587_p1 = scmp.ne.s32.totalorder %s856_s29, %s586_s8  ;;  %s591_s7 = scalar_lea.hbm %s963_s1, 64 }
  0x37   : > { %p592_p2 = scmp.lt.u32.totalorder %s856_s29, %s963_s1  ;;  %p593_p5 = scmp.lt.u32.totalorder %s591_s7, %s586_s8 }
  0x38   : > { %p589_p6 = pnand %p587_p1, %p558_p3  ;;  %p595_p7 = scmp.lt.u32.totalorder %s586_s8, %s856_s29 }
  0x39   : > { %p594_p4 = por %p593_p5, %p592_p2 }
  0x3a   : > { %p590_p13 = pneg %p589_p6 }
  0x3b   : > { %p596_p10 = por %p595_p7, %p594_p4 }
  0x3d   : > { %p597_p12 = pnand %p596_p10, %p590_p13 }
  0x3f   : > { %600 = shalt.err (!%p597_p12)
}
  0x40   : > { %s601_s18 = scalar_lea.vmem %s858_s4, 32  ;;  %s707_s22 = smov [#allocation5]  }
  0x41   : > { %p602_p9 = scmp.ne.s32.totalorder %s858_s4, %s601_s18  ;;  %s606_s23 = sshll.u32 %s707_s22, 4  ;;  %s607_s23 = int_to_ptr.vmem [resolvable:$false] %s606_s23 }
  0x42   : > { %s608_s30 = scalar_lea.vmem %s607_s23, 64  ;;  %p609_p8 = scmp.lt.s32.totalorder %s858_s4, %s607_s23 }
  0x43   : > { %p604_p1 = pnand %p602_p9, %p558_p3  ;;  %p610_p2 = scmp.lt.s32.totalorder %s608_s30, %s601_s18 }
  0x45   : > { %p605_p6 = pneg %p604_p1  ;;  %p611_p5 = por %p610_p2, %p609_p8 }
  0x47   : > { %p612_p4 = pnand %p611_p5, %p605_p6 }
  0x49   : > { %615 = shalt.err (!%p612_p4)
}
  0x4a   : > { %s708_s8 = smov 16   ;;  %s709_s10 = smov 1  }
  0x4b   : > { %495 = dma.hbm_to_vmem [thread:$0]  (!%p811_p0), %s856_s29, 32, %s858_s4, %s185_s6, %s708_s8, %s708_s8, %s709_s10  }
  0x4c   : > { %215 = sbr.rel (%p849_p11) target bundleno = 116 (0x74), region = 32  ;;  %s889_s5 = sand.u32 (!%p849_p11), 1, %s686_s13  }
  0x4d   : > { %s464_s7 = sshll.u32 (!%p849_p11), %s889_s5, 5  ;;  %s218_s11 = scalar_lea.sflag (!%p849_p11), [#allocation3], %s889_s5 }
  0x4e   : > { %s221_s19 = scalar_lea.vmem (!%p849_p11), [#allocation2], %s464_s7  ;;  %p975_p8 = scmp.ne.s32.totalorder (!%p849_p11), %s969_s24, 0 }
  0x53   : > { %669 = dma.done.wait (%p975_p8), %s218_s11, 512  }
  0x54   : > { %671 = vsyncadd (%p975_p8), %s218_s11, 4294966784  ;;  %s465_s28 = sshll.u32 %s889_s5, 1  ;;  %s227_s9 = scalar_lea.sflag [#allocation6], %s889_s5 }
  0x55   : > { %s230_s21 = scalar_lea.vmem [#allocation5], %s465_s28 }
  0x56   : > { %673 = dma.done.wait (%p975_p8), %s227_s9, 32  }
  0x57   : > { %675 = vsyncadd (%p975_p8), %s227_s9, 4294967264  ;;  %s467_s29 = sshll.u32 %s694_s15, 1  ;;  %v272_v0 = vld [vmem:[%s221_s19] sm:$0xff]  ;;  %s261_s22 = scalar_lea.vmem [#allocation7], %s464_s7  ;;  %v273_v4 = vld [vmem:[%s221_s19 + $0x8] sm:$0xff] }
  0x58   : > { %p266_p0 = scmp.lt.s32.totalorder %s467_s29, 3  ;;  %v468_v1 = vld [vmem:[%s230_s21] ss:$0 sm:$0xff]  ;;  %s333_s23 = sshll.u32 %s261_s22, 4  ;;  %v274_v5 = vld [vmem:[%s221_s19 + $0x10] sm:$0xff]  ;;  %v275_v10 = vld [vmem:[%s221_s19 + $0x18] sm:$0xff]  ;;  %s908_s23 = int_to_ptr.vmem [resolvable:$true] %s333_s23 }
  0x59   : > { %v292_v3 = vmul.f32 %v468_v1, %v272_v0  ;;  %v469_v6 = vld [vmem:[%s230_s21 + $0x1] ss:$0 sm:$0xff]  ;;  %v293_v7 = vmul.f32 %v468_v1, %v273_v4  ;;  %s482_s24 = sshll.u32 %s694_s15, 9  ;;  %s317_s15 = scalar_lea.sflag [#allocation4], %s889_s5 }
  0x5a   : > { %s987_s29 = smov (!%p266_p0, %s467_s29), 3  ;;  %v294_v9 = vmul.f32 %v469_v6, %v274_v5  ;;  %v295_v12 = vmul.f32 %v469_v6, %v275_v10  ;;  %s913_s10 = scalar_lea.hbm %s965_s3, %s482_s24 }
  0x5b   : > { %s268_s18 = scalar_lea.vmem %s964_s2, %s987_s29  ;;  %s616_s7 = scalar_lea.vmem %s908_s23, 512 }
  0x5c   : > { %v470_v2 = vld [vmem:[%s268_s18] ss:$0 sm:$0xff]  ;;  %v471_v8 = vld [vmem:[%s268_s18 + $0x1] ss:$0 sm:$0xff]  ;;  %p617_p3 = scmp.ne.s32.totalorder %s908_s23, %s616_s7  ;;  %p976_p11 = scmp.ne.s32.totalorder %s970_s25, 0 }
  0x5d   : > { %v308_v11 = vmax.f32 %v292_v3, %v470_v2  ;;  %v309_v13 = vmax.f32 %v293_v7, %v470_v2  ;;  %v310_v14 = vmax.f32 %v294_v9, %v471_v8  ;;  %v311_v15 = vmax.f32 %v295_v12, %v471_v8  ;;  %s710_s11 = smov [#allocation7]  }
  0x5e   : > { %p618_p13 = pnand %p617_p3, %p976_p11  ;;  %s620_s19 = sshll.u32 %s710_s11, 4  ;;  %s621_s19 = int_to_ptr.vmem [resolvable:$false] %s620_s19 }
  0x5f   : > { %312 = vst [vmem:[%s261_s22] sm:$0xff] %v308_v11  ;;  %313 = vst [vmem:[%s261_s22 + $0x8] sm:$0xff] %v309_v13  ;;  %s622_s28 = scalar_lea.vmem %s621_s19, 1024  ;;  %p623_p10 = scmp.lt.s32.totalorder %s908_s23, %s621_s19 }
  0x60   : > { %314 = vst [vmem:[%s261_s22 + $0x10] sm:$0xff] %v310_v14  ;;  %315 = vst [vmem:[%s261_s22 + $0x18] sm:$0xff] %v311_v15  ;;  %p619_p7 = pneg %p618_p13  ;;  %p624_p12 = scmp.lt.s32.totalorder %s622_s28, %s616_s7 }
  0x62   : > { %p625_p9 = por %p624_p12, %p623_p10 }
  0x64   : > { %p626_p1 = pnand %p625_p9, %p619_p7 }
  0x66   : > { %629 = shalt.err (!%p626_p1)
}
  0x67   : > { %s630_s9 = scalar_lea.hbm %s913_s10, 512  ;;  %s634_s4 = scalar_lea.hbm %s965_s3, 1024 }
  0x68   : > { %p631_p6 = scmp.ne.s32.totalorder %s913_s10, %s630_s9  ;;  %p635_p4 = scmp.lt.u32.totalorder %s913_s10, %s965_s3 }
  0x69   : > { %p636_p8 = scmp.lt.u32.totalorder %s634_s4, %s630_s9  ;;  %p638_p3 = scmp.lt.u32.totalorder %s630_s9, %s913_s10 }
  0x6a   : > { %p632_p2 = pnand %p631_p6, %p976_p11 }
  0x6b   : > { %p637_p0 = por %p636_p8, %p635_p4 }
  0x6c   : > { %p633_p5 = pneg %p632_p2 }
  0x6d   : > { %p639_p13 = por %p638_p3, %p637_p0 }
  0x6f   : > { %p640_p7 = pnand %p639_p13, %p633_p5 }
  0x71   : > { %643 = shalt.err (!%p640_p7)
}
  0x72   : > { %s711_s22 = smov 128   ;;  %s712_s24 = smov 8  }
  0x73   : > { %487 = dma.vmem_to_hbm [thread:$0]  (%p976_p11), %s908_s23, 512, %s913_s10, %s317_s15, %s711_s22, %s711_s22, %s712_s24  }
  0x74 PF: > { %s348_s30 = sand.u32 1, %s682_s12   ;;  %p977_p10 = scmp.ne.s32.totalorder %s971_s27, 0 }
  0x75   : > { %p978_p12 = scmp.ge.s32.totalorder %s702_s17, 2  ;;  %s349_s8 = scalar_lea.sflag [#allocation4], %s348_s30 }
  0x77   : > { %p497_p9 = pnand %p978_p12, %p977_p10 }
  0x79   : > { %677 = dma.done.wait (!%p497_p9), %s349_s8, 512  }
  0x7a   : > { %679 = vsyncadd (!%p497_p9), %s349_s8, 4294966784  ;;  %s22_s17 = sadd.s32 1, %s702_s17   ;;  %s979_s12 = smov %s686_s13 }
  0x7b   : > { %p19_p1 = scmp.ge.s32.totalorder %s22_s17, 4   ;;  %s980_s13 = smov %s690_s14 }
  0x7c   : > { %s981_s14 = smov %s789_s26  ;;  %s982_s15 = smov %s698_s16 }
  0x7d   : > { %s983_s16 = smov %s985_s20  ;;  %21 = sbr.rel (!%p19_p1) target bundleno = 8 (0x8), region = 93 }
  0x84   :  { %354 = vsyncpa [#allocation3], 1 }
  0x85   :  { %356 = vsyncpa [#allocation3 + $0x1], 1 }
  0x86   :  { %357 = vsyncpa [#allocation6], 1 }
  0x87   :  { %359 = vsyncpa [#allocation6 + $0x1], 1 }
  0x88   :  { %360 = vsyncpa [#allocation4], 1 }
  0x89   :  { %362 = vsyncpa [#allocation4 + $0x1], 1 }

</bundles_post_ra>
